<compile_context>
chip_gen: v5e
topology: v5e:2x2
jax: 0.10.0
libtpu: 0.0.40
codegen_flags: <defaults>
</compile_context>

<pallas_src>
import jax
import jax.numpy as jnp
from jax.experimental import pallas as pl
from jax.experimental.pallas import tpu as pltpu


def _round_up(x: int, m: int) -> int:
    return (x + m - 1) // m * m


def _poso_fused_kernel(x_ref, w_ref, b_ref, o_ref):
    # One MXU matmul over the fused (lane-dense) output dim, then bias add +
    # ReLU on the VPU.  Accumulate in f32 regardless of I/O dtype.
    y = jnp.dot(x_ref[...], w_ref[...], preferred_element_type=jnp.float32)
    y = y + b_ref[...].astype(jnp.float32)       # (TILE_M, N) + (1, N)
    o_ref[...] = jnp.maximum(y, 0.0).astype(o_ref.dtype)


def poso_linear_forward(x, weights, biases, *, tile_m: int = 256):
    """POSOLinear.forward: returns [ReLU(x @ W_i + b_i) for each head].

    x:       (B, dim_in) float32
    weights: list of (dim_in, d_i) float32   (PyTorch linear.weight.T)
    biases:  list of (1, d_i) or (d_i,) float32
    """
    B, dim_in = x.shape
    hidden_dims = [int(w.shape[1]) for w in weights]
    n_total = sum(hidden_dims)

    # ---- Fuse all heads into one lane-dense matmul ------------------------
    w_fused = jnp.concatenate(weights, axis=1)                          # (K, N)
    b_fused = jnp.concatenate([b.reshape(1, -1) for b in biases], axis=1)

    # Pad: K to the f32 sublane pack (8), N to 128 lanes, B to the M tile.
    k_pad = _round_up(dim_in, 8)
    n_pad = _round_up(n_total, 128)
    tile_m = min(tile_m, _round_up(B, 8))
    b_pad_rows = _round_up(B, tile_m)

    x_p = jnp.pad(x, ((0, b_pad_rows - B), (0, k_pad - dim_in)))
    w_p = jnp.pad(w_fused, ((0, k_pad - dim_in), (0, n_pad - n_total)))
    bias_p = jnp.pad(b_fused, ((0, 0), (0, n_pad - n_total)))

    grid_m = b_pad_rows // tile_m

    out_padded = pl.pallas_call(
        _poso_fused_kernel,
        out_shape=jax.ShapeDtypeStruct((b_pad_rows, n_pad), x.dtype),
        grid=(grid_m,),
        in_specs=[
            pl.BlockSpec((tile_m, k_pad), lambda i: (i, 0)),   # x batch tile
            pl.BlockSpec((k_pad, n_pad), lambda i: (0, 0)),    # fused W (VMEM-resident)
            pl.BlockSpec((1, n_pad), lambda i: (0, 0)),        # fused bias
        ],
        out_specs=pl.BlockSpec((tile_m, n_pad), lambda i: (i, 0)),
        compiler_params=pltpu.CompilerParams(
            # Batch tiles are independent -> megacore sharding on v7x.
            dimension_semantics=("parallel",),
        ),
    )(x_p, w_p, bias_p)

    # ---- Split back into per-head outputs (free slices at XLA level) ------
    outs = []
    off = 0
    for d in hidden_dims:
        outs.append(out_padded[:B, off:off + d])
        off += d
    return outs


def init_poso_linear_params(key, dim_in, hidden_dims):
    """Deterministic parameter init (Kaiming-uniform-like, matching shapes)."""
    weights, biases = [], []
    for dim_out in hidden_dims:
        kw, kb, key = jax.random.split(key, 3)
        bound = 1.0 / jnp.sqrt(float(dim_in))
        # PyTorch stores weight as (out, in); we store the transpose (in, out).
        w = jax.random.uniform(kw, (dim_in, dim_out), jnp.float32, -bound, bound)
        b = jax.random.uniform(kb, (1, dim_out), jnp.float32, -bound, bound)
        weights.append(w)
        biases.append(b)
    return weights, biases


if __name__ == "__main__":
    key = jax.random.PRNGKey(0)
    batch, dim_in = 2, 32
    hidden_dims = [16, 32, 64]

    kx, kp = jax.random.split(key)
    x = jax.random.normal(kx, (batch, dim_in), jnp.float32)
    weights, biases = init_poso_linear_params(kp, dim_in, hidden_dims)

    outs = poso_linear_forward(x, weights, biases)
    outs = [jax.block_until_ready(o) for o in outs]

    # Cross-check against plain JAX reference.
    refs = [jnp.maximum(x @ w + b, 0.0) for w, b in zip(weights, biases)]
    for o, r, d in zip(outs, refs, hidden_dims):
        assert o.shape == (batch, d), o.shape
        assert jnp.allclose(o, r, atol=1e-5, rtol=1e-5)

    print("KERNEL_OK")
</pallas_src>

<mosaic_0001>
module attributes {stable_mosaic.version = 11 : i64} {
  func.func @_poso_fused_kernel(%arg0: i32, %arg1: memref<8x32xf32, #tpu.memory_space<vmem>>, %arg2: memref<32x128xf32, #tpu.memory_space<vmem>>, %arg3: memref<1x128xf32, #tpu.memory_space<vmem>>, %arg4: memref<8x128xf32, #tpu.memory_space<vmem>>) attributes {dimension_semantics = [#tpu.dimension_semantics<parallel>], iteration_bounds = array<i64: 1>, scalar_prefetch = 0 : i64, scratch_operands = 0 : i64, tpu.core_type = #tpu.core_type<tc>, window_params = [{transform_indices = @transform_0, window_bounds = array<i64: 8, 32>}, {pipeline_mode = #tpu.pipeline_mode<synchronous>, transform_indices = @transform_1, window_bounds = array<i64: 32, 128>}, {pipeline_mode = #tpu.pipeline_mode<synchronous>, transform_indices = @transform_2, window_bounds = array<i64: 1, 128>}, {transform_indices = @transform_3, window_bounds = array<i64: 8, 128>}]} {
    %c0 = arith.constant 0 : index
    %c0_0 = arith.constant 0 : index
    %0 = vector.load %arg1[%c0, %c0_0] : memref<8x32xf32, #tpu.memory_space<vmem>>, vector<8x32xf32>
    %c0_1 = arith.constant 0 : index
    %c0_2 = arith.constant 0 : index
    %1 = vector.load %arg2[%c0_1, %c0_2] : memref<32x128xf32, #tpu.memory_space<vmem>>, vector<32x128xf32>
    %cst = arith.constant dense<0.000000e+00> : vector<8x128xf32>
    %2 = tpu.matmul %0, %1, %cst {dimension_numbers = #tpu.dot_dimension_numbers<[1], [0], [0], [1], [0, 0, 1, 1], [], []>} : vector<8x32xf32>, vector<32x128xf32>, vector<8x128xf32> -> vector<8x128xf32>
    %c0_3 = arith.constant 0 : index
    %c0_4 = arith.constant 0 : index
    %3 = vector.load %arg3[%c0_3, %c0_4] : memref<1x128xf32, #tpu.memory_space<vmem>>, vector<1x128xf32>
    %4 = vector.broadcast %3 : vector<1x128xf32> to vector<8x128xf32>
    %5 = arith.addf %2, %4 : vector<8x128xf32>
    %cst_5 = arith.constant 0.000000e+00 : f32
    %6 = vector.broadcast %cst_5 : f32 to vector<8x128xf32>
    %7 = arith.maximumf %5, %6 : vector<8x128xf32>
    %c0_6 = arith.constant 0 : index
    %c0_7 = arith.constant 0 : index
    %8 = vector.load %arg4[%c0_6, %c0_7] : memref<8x128xf32, #tpu.memory_space<vmem>>, vector<8x128xf32>
    tpu.vector_store %arg4[%c0_6, %c0_7], %7 {strides = array<i32>} : memref<8x128xf32, #tpu.memory_space<vmem>>, vector<8x128xf32>,
    return
  }
  func.func @transform_0(%arg0: i32) -> (i32, i32) {
    %c0_i32 = arith.constant 0 : i32
    %c0_i32_0 = arith.constant 0 : i32
    return %arg0, %c0_i32 : i32, i32
  }
  func.func @transform_1(%arg0: i32) -> (i32, i32) {
    %c0_i32 = arith.constant 0 : i32
    %c0_i32_0 = arith.constant 0 : i32
    %c0_i32_1 = arith.constant 0 : i32
    return %c0_i32, %c0_i32_0 : i32, i32
  }
  func.func @transform_2(%arg0: i32) -> (i32, i32) {
    %c0_i32 = arith.constant 0 : i32
    %c0_i32_0 = arith.constant 0 : i32
    %c0_i32_1 = arith.constant 0 : i32
    return %c0_i32, %c0_i32_0 : i32, i32
  }
  func.func @transform_3(%arg0: i32) -> (i32, i32) {
    %c0_i32 = arith.constant 0 : i32
    %c0_i32_0 = arith.constant 0 : i32
    return %arg0, %c0_i32 : i32, i32
  }
}

</mosaic_0001>

<bundles_post_ra>
// kernel: tpu_custom_call.1
= control target key start
LH: loop header
LB: loop body
LE: loop exit
PB: predicated region body
PF: predicated region fallthrough
CT: control target
= control target key end

     0   :  { %8 = vsyncpa [#allocation3], 0  ;;  %s220_s0 = inlined_call_operand.hbm [shape: f32[8,32], index: 0, kind: input, shape index: {}]   ;;  %s221_s1 = inlined_call_operand.hbm [shape: f32[32,128], index: 1, kind: input, shape index: {}]   ;;  %s222_s2 = inlined_call_operand.vmem [shape: f32[1,128], index: 2, kind: input, shape index: {}]   ;;  %s223_s3 = inlined_call_operand.hbm [shape: f32[8,128], index: 3, kind: output, shape index: {}]  }
   0x1   :  { %9 = vsyncpa [#allocation6], 0 }
   0x2   :  { %10 = vsyncpa [#allocation4], 0  ;;  %s16_s14 = sshll.u32 %s220_s0, 4  ;;  %s183_s15 = smov [#allocation2]   ;;  %s17_s14 = int_to_ptr.hbm [resolvable:$true] %s16_s14 }
   0x3   :  { %s18_s16 = sshll.u32 %s183_s15, 4  ;;  %s26_s19 = sshll.u32 %s221_s1, 4  ;;  %s19_s16 = int_to_ptr.vmem [resolvable:$true] %s18_s16  ;;  %s27_s19 = int_to_ptr.hbm [resolvable:$true] %s26_s19 }
   0x4   :  { %21 = dma.hbm_to_vmem [thread:$0]  %s17_s14, 128, %s19_s16, [#allocation3]  }
   0x5   :  { %s184_s20 = smov [#allocation5]   ;;  %s185_s22 = smov 128  }
   0x6   :  { %s28_s21 = sshll.u32 %s184_s20, 4  ;;  %s186_s23 = smov 8   ;;  %s29_s21 = int_to_ptr.vmem [resolvable:$true] %s28_s21 }
   0x7   :  { %34 = dma.hbm_to_vmem [thread:$0]  %s27_s19, 512, %s29_s21, [#allocation6], %s185_s22, %s185_s22, %s186_s23  }
   0x8   :  { %177 = dma.done.wait [#allocation3], 128  }
   0x9   :  { %178 = vsyncadd [#allocation3], 4294967168 }
   0xa   :  { %179 = dma.done.wait [#allocation6], 512  }
   0xb   :  { %180 = vsyncadd [#allocation6], 4294966784  ;;  %v49_v0 = vld [vmem:[#allocation5 + $0x18] sm:$0xff]  ;;  %v48_v1 = vld [vmem:[#allocation5 + $0x10] sm:$0xff]  ;;  %vm54_vm0 = vcmask 261120   ;;  %s187_s24 = smov [#allocation7]  }
   0xc   :  { %70 = vmatpush.msra.mxu0 %v49_v0  ;;  %v47_v2 = vld [vmem:[#allocation5 + $0x8] sm:$0xff]  ;;  %v46_v3 = vld [vmem:[#allocation5] sm:$0xff]  ;;  %v45_v4 = vld [vmem:[#allocation2] sm:$0xff]  ;;  %s85_s25 = sshll.u32 %s187_s24, 4  ;;  %s87_s28 = sshll.u32 %s223_s3, 4  ;;  %s86_s25 = int_to_ptr.vmem [resolvable:$true] %s85_s25  ;;  %s88_s28 = int_to_ptr.hbm [resolvable:$true] %s87_s28 }
   0xd   :  { %v104_v5 = vld [vmem:[%s222_s2] ss:$0 sm:$0xff] }
   0xe   :  { %71 = vmatpush.msra.mxu0 %v48_v1 }
  0x10   :  { %72 = vmatpush.msra.mxu0 %v47_v2 }
  0x12   :  { %73 = vmatpush.msra.mxu0 %v46_v3 }
  0x13   :  { %98 = vmatmul.msk.f32.vlgmr.msra.gmra.mxu0 %vm54_vm0, %v45_v4 }
  0x90   :  { %v75_v6 = vpop.f32.mrf.mxu0 }
  0x91   :  { %v76_v7 = vadd.f32 %v104_v5, %v75_v6 }
  0x93   :  { %v78_v8 = vmax.f32 %v76_v7, 0.0 }
  0x95   :  { %79 = vst [vmem:[#allocation7] sm:$0xff] %v78_v8 }
  0x96   :  { %90 = dma.vmem_to_hbm [thread:$0]  %s86_s25, 128, %s88_s28, [#allocation4]  }
  0x97   :  { %181 = dma.done.wait [#allocation4], 128  }
  0x98   :  { %182 = vsyncadd [#allocation4], 4294967168 }
  0x99   :  { %95 = vsyncpa [#allocation3], 1 }
  0x9a   :  { %96 = vsyncpa [#allocation6], 1 }
  0x9b   :  { %97 = vsyncpa [#allocation4], 1 }

</bundles_post_ra>
